<compile_context>
chip_gen: v5e
topology: v5e:2x2
jax: 0.10.0
libtpu: 0.0.40
codegen_flags: <defaults>
</compile_context>

<pallas_src>
import functools

import jax
import jax.numpy as jnp
from jax.experimental import pallas as pl
from jax.experimental.pallas import tpu as pltpu


# ----------------------------------------------------------------------------
# Pallas kernels: dilated circular conv1d  (forward, inverse=False path)
# ----------------------------------------------------------------------------
def _shift_lanes(x, shift, length):
    """Circular shift along the last axis: out[..., t] = x[..., (t - shift) % L].

    `shift` is a static Python int, so this lowers to two lane slices + a
    concat (always supported by Mosaic).  It runs once per batch item and is
    amortized over all L tiles.
    """
    s = shift % length
    if s == 0:
        return x
    return jnp.concatenate([x[:, length - s:], x[:, :length - s]], axis=1)


def _stack_taps(xb, kernel_size, dilation, pad_l, length):
    """(C_in, L) -> (K*C_in, L): row k*C_in + c = x[c, (t - pad_l + k*dil) % L]."""
    taps = [_shift_lanes(xb, pad_l - k * dilation, length)
            for k in range(kernel_size)]
    return taps[0] if kernel_size == 1 else jnp.concatenate(taps, axis=0)


def _conv_kernel_single(x_ref, w_ref, b_ref, o_ref, *,
                        kernel_size, dilation, pad_l, length):
    # Single L tile per batch item: no scratch round trip.
    # x_ref: (1, C_in, L), w_ref: (C_out, K*C_in) bf16, b_ref: (C_out, 1) f32,
    # o_ref: (1, C_out, L)
    xb = x_ref[0].astype(w_ref.dtype)
    stacked = _stack_taps(xb, kernel_size, dilation, pad_l, length)
    acc = jnp.dot(w_ref[...], stacked, preferred_element_type=jnp.float32)
    o_ref[0] = (acc + b_ref[...]).astype(o_ref.dtype)


def _conv_kernel_tiled(x_ref, w_ref, b_ref, o_ref, xs_ref, *,
                       kernel_size, dilation, pad_l, length, tile_l):
    # x_ref : (1, C_in, L)      current batch item (resident across L tiles)
    # w_ref : (C_out, K*C_in)   tap-fused weight (bf16), resident
    # b_ref : (C_out, 1)        bias (zeros when no bias), f32, resident
    # o_ref : (1, C_out, TL)    output tile
    # xs_ref: (K*C_in, L)       scratch: K circularly shifted activation copies
    lt = pl.program_id(1)

    @pl.when(lt == 0)
    def _fill_scratch():
        xb = x_ref[0].astype(xs_ref.dtype)
        xs_ref[...] = _stack_taps(xb, kernel_size, dilation, pad_l, length)

    start = pl.multiple_of(lt * tile_l, tile_l)
    xt = xs_ref[:, pl.ds(start, tile_l)]                 # (K*C_in, TL), aligned
    acc = jnp.dot(w_ref[...], xt, preferred_element_type=jnp.float32)
    o_ref[0] = (acc + b_ref[...]).astype(o_ref.dtype)    # fused bias


def _pick_tile_l(L):
    # Largest lane-aligned output tile (multiple of 128) dividing L; otherwise
    # a single full-length tile.  Bigger tiles amortize per-grid-step overhead
    # and keep output stores unmasked/lane-dense.
    for cand in (1024, 512, 256, 128):
        if L > cand and L % cand == 0:
            return cand
    return L


def dilated_circ_conv1d_pallas(x, weight, dilation, bias=None, *,
                               compute_dtype=jnp.bfloat16):
    """x: (B, C_in, L), weight: (C_out, C_in, K) -> (B, C_out, L)."""
    B, C_in, L = x.shape
    C_out, _, K = weight.shape
    ks_ = dilation * (K - 1) + 1
    pad_l = ks_ // 2

    # Tap-fused weight: W2[o, k*C_in + c] = weight[o, c, k]  -> (C_out, K*C_in)
    w2 = jnp.transpose(weight, (0, 2, 1)).reshape(C_out, K * C_in)
    w2 = w2.astype(compute_dtype)
    b2 = (jnp.zeros((C_out, 1), jnp.float32) if bias is None
          else bias.reshape(C_out, 1).astype(jnp.float32))

    tile_l = _pick_tile_l(L)
    n_lt = L // tile_l

    if n_lt == 1:
        kern = functools.partial(
            _conv_kernel_single, kernel_size=K, dilation=dilation,
            pad_l=pad_l, length=L)
        scratch_shapes = []
    else:
        kern = functools.partial(
            _conv_kernel_tiled, kernel_size=K, dilation=dilation,
            pad_l=pad_l, length=L, tile_l=tile_l)
        scratch_shapes = [pltpu.VMEM((K * C_in, L), compute_dtype)]

    return pl.pallas_call(
        kern,
        out_shape=jax.ShapeDtypeStruct((B, C_out, L), x.dtype),
        grid_spec=pltpu.PrefetchScalarGridSpec(
            num_scalar_prefetch=0,
            grid=(B, n_lt),
            in_specs=[
                # Full-length activation block, resident across the L-tile axis
                # (re-DMA'd only when the batch index changes).
                pl.BlockSpec((1, C_in, L), lambda b, lt: (b, 0, 0)),
                pl.BlockSpec((C_out, K * C_in), lambda b, lt: (0, 0)),
                pl.BlockSpec((C_out, 1), lambda b, lt: (0, 0)),
            ],
            out_specs=pl.BlockSpec((1, C_out, tile_l), lambda b, lt: (b, 0, lt)),
            scratch_shapes=scratch_shapes,
        ),
        compiler_params=pltpu.CompilerParams(
            # Batch axis is independent (megacore-shardable); the L-tile axis
            # is sequential because the scratch is filled on its first step.
            dimension_semantics=("parallel", "arbitrary"),
            vmem_limit_bytes=48 * 1024 * 1024,
        ),
    )(x, w2, b2)


# ----------------------------------------------------------------------------
# Glue: power iteration + Björck orthonormalization of the circular-conv
# operator on length-K signals (operator represented as a small dense matrix).
# TODO(synk): `_power_iteration_conv1d_circ` / `_bjorck_orthonormalize_conv1d_circ`
# are not defined in the provided source; the standard operator-space semantics
# (spectral-norm scaling + order-1 Björck: W <- 1.5 W - 0.5 W W^T W) are used,
# with fixed iteration counts instead of the absolute-tolerance early stop.
# ----------------------------------------------------------------------------
def _conv_operator_matrix(w):
    # Dense matrix of the "same"-padded circular conv operator on length-K
    # circular signals:  M[(o,t),(i,j)] = w[o, i, (j - t + K//2) mod K].
    C_out, C_in, K = w.shape
    p_l = K // 2
    t = jnp.arange(K)[:, None]
    j = jnp.arange(K)[None, :]
    k_idx = (j - t + p_l) % K                              # (K, K)
    M = w[:, :, k_idx]                                     # (C_out, C_in, K, K)
    return jnp.transpose(M, (0, 2, 1, 3)).reshape(C_out * K, C_in * K)


def _matrix_to_kernel(M, C_out, C_in, K):
    p_l = K // 2
    M4 = M.reshape(C_out, K, C_in, K)[:, 0, :, :]          # (C_out, C_in, K)
    j_idx = (jnp.arange(K) - p_l) % K
    return jnp.take(M4, j_idx, axis=2)                     # (C_out, C_in, K)


def _power_iteration(M, v, iters):
    sigma = jnp.float32(1.0)
    for _ in range(iters):
        u = M @ v
        u = u / (jnp.linalg.norm(u) + 1e-12)
        v = M.T @ u
        sigma = jnp.linalg.norm(v) + 1e-12
        v = v / sigma
    return sigma, v


def _bjorck_orthonormalize(M, order, iters):
    # order-1 Taylor expansion (module default bjorck_order=1)
    A = M
    for _ in range(iters):
        A = 1.5 * A - 0.5 * (A @ (A.T @ A))
    return A


# ----------------------------------------------------------------------------
# Module port
# ----------------------------------------------------------------------------
class DilatedBjorckConv1dPallas:
    def __init__(self, in_channels, out_channels, kernel_size, *, key,
                 bias=False, init="permutation",
                 power_iters=10, bjorck_order=1, bjorck_iters=20):
        self.in_channels = in_channels
        self.out_channels = out_channels
        self.kernel_size = kernel_size
        self.power_iters = power_iters
        self.bjorck_order = bjorck_order
        self.bjorck_iters = bjorck_iters

        k_perm, k_v = jax.random.split(key)
        max_c = max(out_channels, in_channels)
        min_c = min(out_channels, in_channels)
        perm = jax.random.permutation(k_perm, max_c)[:min_c]
        if init == "identical":
            perm = jnp.sort(perm)
        elif init == "reverse":
            perm = jnp.sort(perm)[::-1]
        matrix = jnp.zeros((out_channels, in_channels), jnp.float32)
        if out_channels < in_channels:
            matrix = matrix.at[jnp.arange(min_c), perm].set(1.0)   # matrix[:, perm] = I
        else:
            matrix = matrix.at[perm, jnp.arange(min_c)].set(1.0)   # matrix[perm, :] = I
        self.params = jnp.zeros(
            (out_channels, in_channels, kernel_size), jnp.float32
        ).at[:, :, kernel_size // 2].set(matrix)
        self.v_vec = jax.random.normal(k_v, (1, in_channels, kernel_size), jnp.float32)
        self.bias = jnp.zeros((out_channels,), jnp.float32) if bias else None

    def _project(self):
        M = _conv_operator_matrix(self.params)
        v0 = self.v_vec.reshape(-1)
        scale, _ = _power_iteration(M, v0, self.power_iters)
        A = _bjorck_orthonormalize(M / scale, self.bjorck_order, self.bjorck_iters)
        return _matrix_to_kernel(A, self.out_channels, self.in_channels,
                                 self.kernel_size)

    def __call__(self, x):
        # x: (B, in_channels, L) -> (B, out_channels, L)   (inverse=False path)
        L = x.shape[2]
        if self.kernel_size == 1 or self.kernel_size >= L:
            dilation = 1
        else:
            dilation = (L - 1) // self.kernel_size + 1
        weight = self._project()
        return dilated_circ_conv1d_pallas(x, weight, dilation, bias=self.bias)
        # TODO(synk): inverse=True path (F.conv_transpose1d) not implemented.


# ----------------------------------------------------------------------------
# Plain-JAX reference (same math, same bf16-input / f32-accumulate precision)
# ----------------------------------------------------------------------------
def _reference_forward(x, weight, dilation):
    B, C_in, L = x.shape
    C_out, _, K = weight.shape
    ks_ = dilation * (K - 1) + 1
    pad_l = ks_ // 2
    xb = x.astype(jnp.bfloat16)
    wb = weight.astype(jnp.bfloat16)
    out = jnp.zeros((B, C_out, L), jnp.float32)
    for k in range(K):
        idx = (jnp.arange(L) - pad_l + k * dilation) % L
        out = out + jnp.einsum("oc,bcl->bol", wb[:, :, k], xb[:, :, idx],
                               preferred_element_type=jnp.float32)
    return out.astype(x.dtype)


if __name__ == "__main__":
    key = jax.random.PRNGKey(0)
    k_layer, k_x, k_bias, k_layer2, k_x2 = jax.random.split(key, 5)

    # --- small config (single L tile, scratch-free path), with fused bias ----
    B, C_in, C_out, L, K = 2, 4, 4, 16, 3
    layer = DilatedBjorckConv1dPallas(C_in, C_out, K, key=k_layer, bias=True)
    layer.bias = jax.random.normal(k_bias, (C_out,), jnp.float32)  # nonzero bias
    x = jax.random.normal(k_x, (B, C_in, L), jnp.float32)

    out = jax.block_until_ready(layer(x))
    assert out.shape == (B, C_out, L)

    dil = 1 if (K == 1 or K >= L) else (L - 1) // K + 1
    ref = _reference_forward(x, layer._project(), dil) + layer.bias[None, :, None]
    err = float(jnp.max(jnp.abs(out - ref)))
    assert err < 5e-3, err

    # --- larger lane-aligned config (exercises L tiling: 2048 -> 2x1024) -----
    B2, C2, L2, K2 = 2, 8, 2048, 3
    layer2 = DilatedBjorckConv1dPallas(C2, C2, K2, key=k_layer2, bias=False)
    x2 = jax.random.normal(k_x2, (B2, C2, L2), jnp.float32)

    out2 = jax.block_until_ready(layer2(x2))
    assert out2.shape == (B2, C2, L2)

    dil2 = (L2 - 1) // K2 + 1
    ref2 = _reference_forward(x2, layer2._project(), dil2)
    err2 = float(jnp.max(jnp.abs(out2 - ref2)))
    assert err2 < 5e-3, err2

    print("KERNEL_OK")
</pallas_src>

<mosaic_0001>
module attributes {stable_mosaic.version = 11 : i64} {
  func.func @_conv_kernel_single(%arg0: i32, %arg1: i32, %arg2: memref<1x4x16xf32, #tpu.memory_space<vmem>>, %arg3: memref<4x12xbf16, #tpu.memory_space<vmem>>, %arg4: memref<4x1xf32, #tpu.memory_space<vmem>>, %arg5: memref<1x4x16xf32, #tpu.memory_space<vmem>>) attributes {dimension_semantics = [#tpu.dimension_semantics<parallel>, #tpu.dimension_semantics<arbitrary>], iteration_bounds = array<i64: 2, 1>, scalar_prefetch = 0 : i64, scratch_operands = 0 : i64, tpu.core_type = #tpu.core_type<tc>, window_params = [{transform_indices = @transform_0, window_bounds = array<i64: 1, 4, 16>}, {pipeline_mode = #tpu.pipeline_mode<synchronous>, transform_indices = @transform_1, window_bounds = array<i64: 4, 12>}, {pipeline_mode = #tpu.pipeline_mode<synchronous>, transform_indices = @transform_2, window_bounds = array<i64: 4, 1>}, {transform_indices = @transform_3, window_bounds = array<i64: 1, 4, 16>}]} {
    %c0 = arith.constant 0 : index
    %c0_0 = arith.constant 0 : index
    %c0_1 = arith.constant 0 : index
    %0 = vector.load %arg2[%c0, %c0_0, %c0_1] : memref<1x4x16xf32, #tpu.memory_space<vmem>>, vector<1x4x16xf32>
    %1 = vector.shape_cast %0 : vector<1x4x16xf32> to vector<4x16xf32>
    %2 = arith.truncf %1 : vector<4x16xf32> to vector<4x16xbf16>
    %3 = vector.extract_strided_slice %2 {offsets = [0, 10], sizes = [4, 6], strides = [1, 1]} : vector<4x16xbf16> to vector<4x6xbf16>
    %4 = vector.extract_strided_slice %2 {offsets = [0, 0], sizes = [4, 10], strides = [1, 1]} : vector<4x16xbf16> to vector<4x10xbf16>
    %5 = tpu.concatenate %3, %4 in 1 : vector<4x6xbf16>, vector<4x10xbf16> -> vector<4x16xbf16>
    %6 = vector.extract_strided_slice %2 {offsets = [0, 6], sizes = [4, 10], strides = [1, 1]} : vector<4x16xbf16> to vector<4x10xbf16>
    %7 = vector.extract_strided_slice %2 {offsets = [0, 0], sizes = [4, 6], strides = [1, 1]} : vector<4x16xbf16> to vector<4x6xbf16>
    %8 = tpu.concatenate %6, %7 in 1 : vector<4x10xbf16>, vector<4x6xbf16> -> vector<4x16xbf16>
    %9 = tpu.concatenate %5, %2, %8 in 0 : vector<4x16xbf16>, vector<4x16xbf16>, vector<4x16xbf16> -> vector<12x16xbf16>
    %c0_2 = arith.constant 0 : index
    %c0_3 = arith.constant 0 : index
    %10 = vector.load %arg3[%c0_2, %c0_3] : memref<4x12xbf16, #tpu.memory_space<vmem>>, vector<4x12xbf16>
    %cst = arith.constant dense<0.000000e+00> : vector<4x16xf32>
    %11 = tpu.matmul %10, %9, %cst {dimension_numbers = #tpu.dot_dimension_numbers<[1], [0], [0], [1], [0, 0, 1, 1], [], []>} : vector<4x12xbf16>, vector<12x16xbf16>, vector<4x16xf32> -> vector<4x16xf32>
    %c0_4 = arith.constant 0 : index
    %c0_5 = arith.constant 0 : index
    %12 = vector.load %arg4[%c0_4, %c0_5] : memref<4x1xf32, #tpu.memory_space<vmem>>, vector<4x1xf32>
    %13 = vector.broadcast %12 : vector<4x1xf32> to vector<4x16xf32>
    %14 = arith.addf %11, %13 : vector<4x16xf32>
    %c0_6 = arith.constant 0 : index
    %c0_7 = arith.constant 0 : index
    %c0_8 = arith.constant 0 : index
    %15 = vector.load %arg5[%c0_6, %c0_7, %c0_8] : memref<1x4x16xf32, #tpu.memory_space<vmem>>, vector<1x4x16xf32>
    %16 = vector.shape_cast %15 : vector<1x4x16xf32> to vector<4x16xf32>
    %17 = vector.shape_cast %14 : vector<4x16xf32> to vector<1x4x16xf32>
    tpu.vector_store %arg5[%c0_6, %c0_7, %c0_8], %17 {strides = array<i32>} : memref<1x4x16xf32, #tpu.memory_space<vmem>>, vector<1x4x16xf32>,
    return
  }
  func.func @transform_0(%arg0: i32, %arg1: i32) -> (i32, i32, i32) {
    %c0_i32 = arith.constant 0 : i32
    %c0_i32_0 = arith.constant 0 : i32
    %c0_i32_1 = arith.constant 0 : i32
    return %arg0, %c0_i32, %c0_i32_0 : i32, i32, i32
  }
  func.func @transform_1(%arg0: i32, %arg1: i32) -> (i32, i32) {
    %c0_i32 = arith.constant 0 : i32
    %c0_i32_0 = arith.constant 0 : i32
    %c0_i32_1 = arith.constant 0 : i32
    return %c0_i32, %c0_i32_0 : i32, i32
  }
  func.func @transform_2(%arg0: i32, %arg1: i32) -> (i32, i32) {
    %c0_i32 = arith.constant 0 : i32
    %c0_i32_0 = arith.constant 0 : i32
    %c0_i32_1 = arith.constant 0 : i32
    return %c0_i32, %c0_i32_0 : i32, i32
  }
  func.func @transform_3(%arg0: i32, %arg1: i32) -> (i32, i32, i32) {
    %c0_i32 = arith.constant 0 : i32
    %c0_i32_0 = arith.constant 0 : i32
    return %arg0, %c0_i32, %arg1 : i32, i32, i32
  }
}

</mosaic_0001>

<bundles_post_ra>
// kernel: tpu_custom_call.1
= control target key start
LH: loop header
LB: loop body
LE: loop exit
PB: predicated region body
PF: predicated region fallthrough
CT: control target
= control target key end

     0   :  { %8 = vsyncpa [#allocation3], 0  ;;  %s710_s0 = inlined_call_operand.hbm [shape: f32[2,4,16], index: 0, kind: input, shape index: {}]   ;;  %s711_s1 = inlined_call_operand.vmem [shape: bf16[4,12], index: 1, kind: input, shape index: {}]   ;;  %s712_s2 = inlined_call_operand.vmem [shape: f32[4,1], index: 2, kind: input, shape index: {}]   ;;  %s713_s3 = inlined_call_operand.hbm [shape: f32[2,4,16], index: 3, kind: output, shape index: {}]  }
   0x1   :  { %10 = vsyncpa [#allocation3 + $0x1], 0 }
   0x2   :  { %11 = vsyncpa [#allocation4], 0 }
   0x3   :  { %13 = vsyncpa [#allocation4 + $0x1], 0  ;;  %s580_s12 = smov 0   ;;  %s582_s13 = smov 0  }
   0x4   :  { %s584_s14 = smov 0   ;;  %s586_s15 = smov 0  }
   0x5   :  { %s588_s16 = smov 0   ;;  %s590_s17 = smov 0  }
   0x6 LB: > { %s358_s18 = sadd.s32 4294967295, %s553_s17   ;;  %s359_s19 = sadd.s32 4294967294, %s553_s17   ;;  %s553_s17 = sphi %s590_s17, %s19_s17   ;;  %s549_s16 = sphi %s588_s16, %s722_s16   ;;  %s545_s15 = sphi %s586_s15, %s721_s15   ;;  %s541_s14 = sphi %s584_s14, %s720_s14   ;;  %s537_s13 = sphi %s582_s13, %s719_s13   ;;  %s533_s12 = sphi %s580_s12, %s718_s12  }
   0x7   : > { %s31_s20 = sadd.s32 1, %s549_s16  ;;  %s38_s21 = sadd.s32 1, %s541_s14 }
   0x8   : > { %p33_p0 = scmp.ge.s32.totalorder %s31_s20, 2  ;;  %p45_p1 = scmp.ne.s32.totalorder %s541_s14, %s537_s13 }
   0x9   : > { %p46_p2 = scmp.eq.s32.totalorder %s553_s17, 0  ;;  %p51_p3 = scmp.ne.s32.totalorder %s537_s13, %s533_s12 }
   0xa   : > { %s724_s20 = smov (%p33_p0, %s31_s20), 0  ;;  %p52_p5 = scmp.eq.s32.totalorder %s358_s18, 0 }
   0xb   : > { %p621_p4 = por %p46_p2, %p45_p1  ;;  %s35_s23 = ssub.s32 %s549_s16, %s724_s20 }
   0xc   : > { %p119_p6 = scmp.eq.s32.totalorder %s358_s18, 1  ;;  %p36_p7 = scmp.eq.s32.totalorder %s35_s23, 0 }
   0xd   : > { %p627_p8 = por %p52_p5, %p51_p3  ;;  %p125_p10 = scmp.eq.s32.totalorder %s359_s19, 1 }
   0xe   : > { %p631_p9 = por %p119_p6, %p45_p1  ;;  %p361_p12 = scmp.ge.s32.totalorder %s553_s17, 2 }
   0xf   : > { %s636_s26 = scalar_select %p36_p7, %s541_s14, %s38_s21  }
  0x10   : > { %p638_p11 = por %p125_p10, %p51_p3  ;;  %p384_p13 = scmp.lt.s32.totalorder %s553_s17, 2 }
  0x11   : > { %s151_s28 = sand.u32 1, %s541_s14   ;;  %s363_s30 = sshll.u32 %s549_s16, 2 }
  0x12   : > { %s362_s29 = sshll.u32 %s151_s28, 2  ;;  %s159_s6 = scalar_lea.hbm %s710_s0, %s363_s30 }
  0x13   : > { %s155_s7 = scalar_lea.vmem [#allocation2], %s362_s29  ;;  %s161_s9 = sshll.u32 %s159_s6, 4  ;;  %s162_s9 = int_to_ptr.hbm [resolvable:$true] %s161_s9 }
  0x14   : > { %s163_s8 = sshll.u32 %s155_s7, 4  ;;  %p377_p0 = pnand %p384_p13, %p621_p4  ;;  %s164_s8 = int_to_ptr.vmem [resolvable:$true] %s163_s8 }
  0x15   : > { %p364_p1 = scmp.ge.s32.totalorder %s553_s17, 1  ;;  %p168_p2 = scmp.lt.s32.totalorder %s553_s17, 3 }
  0x16   : > { %s152_s10 = scalar_lea.sflag [#allocation3], %s151_s28 }
  0x17   : > { %379 = dma.hbm_to_vmem [thread:$0]  (!%p377_p0), %s162_s9, 64, %s164_s8, %s152_s10  }
  0x18   : > { %p169_p3 = pnand %p364_p1, %p168_p2 }
  0x19   : > { %s654_s11 = sand.u32 (!%p169_p3), 1, %s537_s13  }
  0x1a   : > { %172 = sbr.rel (%p169_p3) target bundleno = 304 (0x130), region = 32  ;;  %s365_s18 = sshll.u32 (!%p169_p3), %s654_s11, 2 }
  0x1b   : > { %s175_s19 = scalar_lea.sflag (!%p169_p3), [#allocation3], %s654_s11  ;;  %s178_s21 = scalar_lea.vmem (!%p169_p3), [#allocation2], %s365_s18 }
  0x1f   : > { %524 = dma.done.wait (%p627_p8), %s175_s19, 64  }
  0x20   : > { %526 = vsyncadd (%p627_p8), %s175_s19, 4294967232  ;;  %v203_v0 = vld [vmem:[%s178_s21] sm:$0xf]  ;;  %s555_s22 = smov 118   ;;  %s556_s23 = smov 122   ;;  %v559_v5 = vmov 0  }
  0x21   : > { %v204_v1 = vpack.c.bf16 %v203_v0, %v203_v0  ;;  %s557_s28 = smov 6   ;;  %s558_s29 = smov 10   ;;  %v234_v4 = vld [vmem:[%s712_s2] sm:$0xf]  ;;  %439 = vset.pattern.permute.xlu2 %v559_v5  ;;  %440 = vset.pattern.permute.xlu0 %v559_v5  ;;  %vm212_vm0 = vcmask 48128   ;;  %vm220_vm1 = vcmask 80896  }
  0x22   : > { %237 = vperm.xlu2 %439, %v234_v4   ;;  %vm227_vm2 = vcmask 1041408   ;;  %vm230_vm3 = vcmask 1043456   ;;  %vm244_vm4 = vcmask 1045504   ;;  %v233_v17 = vld [vmem:[%s711_s1] sm:$0x3]  ;;  %vm240_vm5 = vcmask 97280  }
  0x23   : > { %v206_v2 = vunpack.c.l.b16 %v204_v1  ;;  %s369_s6 = sshll.u32 %s545_s15, 2  ;;  %s201_s10 = scalar_lea.vmem [#allocation5], %s365_s18  ;;  %vm260_vm6 = vcmask 125952  }
  0x24   : > { %s274_s9 = scalar_lea.hbm %s713_s3, %s369_s6  ;;  %s276_s19 = sshll.u32 %s201_s10, 4  ;;  %s277_s19 = int_to_ptr.vmem [resolvable:$true] %s276_s19 }
  0x25   : > { %v207_v3 = vpack.c.b16 %v206_v2, %v206_v2  ;;  %s278_s21 = sshll.u32 %s274_s9, 4  ;;  %s491_s18 = scalar_lea.hbm %s713_s3, 8  ;;  %s279_s21 = int_to_ptr.hbm [resolvable:$true] %s278_s21 }
  0x27   : > { %208 = vrot.lane.b32.xlu1 %v207_v3, %s555_s22  ;;  %216 = vrot.lane.b32.xlu0 %v207_v3, %s556_s23  ;;  %v224_v8 = vrot.slane %v207_v3, 6  ;;  %s263_s22 = scalar_lea.sflag [#allocation4], %s654_s11  ;;  %s485_s23 = sshra.s32 %s279_s21, 4  ;;  %s486_s23 = int_to_ptr.hbm [resolvable:$true] %s485_s23 }
  0x28   : > { %s487_s15 = scalar_lea.hbm %s486_s23, 4  ;;  %p492_p7 = scmp.lt.s32.totalorder %s486_s23, %s713_s3 }
  0x29   : > { %p488_p4 = scmp.ne.s32.totalorder %s486_s23, %s487_s15  ;;  %p493_p8 = scmp.lt.s32.totalorder %s491_s18, %s487_s15 }
  0x2b   : > { %p489_p5 = pnand %p488_p4, %p631_p9  ;;  %p494_p10 = por %p493_p8, %p492_p7 }
  0x2d   : > { %p490_p6 = pneg %p489_p5 }
  0x2f   : > { %210 = vrot.lane.b32.xlu1 %v207_v3, %s557_s28  ;;  %218 = vrot.lane.b32.xlu0 %v207_v3, %s558_s29  ;;  %p495_p13 = pnand %p494_p10, %p490_p6 }
  0x7c   : > { %v238_v18 = vpop.permute.xlu2 %237 }
  0x99   : > { %v209_v6 = vpop.permute.xlu1 %208  ;;  %v217_v7 = vpop.permute.xlu0 %216 }
  0xa1   : > { %v211_v9 = vpop.permute.xlu1 %210  ;;  %v219_v10 = vpop.permute.xlu0 %218 }
  0xa2   : > { %v215_v11 = vsel %vm212_vm0, %v209_v6, %v211_v9  ;;  %v223_v12 = vsel %vm220_vm1, %v217_v7, %v219_v10 }
  0xa3   : > { %v226_v13 = vrot.slane %v223_v12, 4  ;;  %v229_v14 = vsel %vm227_vm2, %v215_v11, %v224_v8 }
  0xa5   : > { %v232_v15 = vsel %vm230_vm3, %v229_v14, %v226_v13 }
  0xa6   : > { %v245_v16 = vsel %vm244_vm4, %v232_v15, 0 }
  0xa7   : > { %254 = vmatpush.bf16.msra.mxu0 %v245_v16 }
  0xaa   : > { %367 = vmatmul.msk.bf16.vlgmr.msra.gmra.mxu0 %vm240_vm5, %v233_v17 }
 0x127   : > { %v256_v19 = vpop.f32.mrf.mxu0 }
 0x128   : > { %v257_v20 = vadd.f32 %v256_v19, %v238_v18 }
 0x12a   : > { %261 = vst.msk [vmem:[%s201_s10] sm:$0xf] %vm260_vm6, %v257_v20 }
 0x12b   : > { %498 = shalt.err (!%p495_p13)
}
 0x12c   : > { %374 = dma.vmem_to_hbm [thread:$0]  (%p631_p9), %s277_s19, 64, %s279_s21, %s263_s22  }
 0x12f   : > { %v258_v21 = vpop.f32.mrf.mxu0 }
 0x130 PF: > { %s290_s11 = sand.u32 1, %s533_s12   ;;  %p381_p0 = pnand %p361_p12, %p638_p11 }
 0x131   : > { %s291_s24 = scalar_lea.sflag [#allocation4], %s290_s11 }
 0x132   : > { %p382_p1 = pneg %p381_p0 }
 0x134   : > { %528 = dma.done.wait (%p382_p1), %s291_s24, 64  }
 0x135   : > { %530 = vsyncadd (%p382_p1), %s291_s24, 4294967232  ;;  %s19_s17 = sadd.s32 1, %s553_s17   ;;  %s718_s12 = smov %s537_s13 }
 0x136   : > { %p16_p2 = scmp.ge.s32.totalorder %s19_s17, 4   ;;  %s719_s13 = smov %s541_s14 }
 0x137   : > { %s720_s14 = smov %s636_s26  ;;  %s721_s15 = smov %s549_s16 }
 0x138   : > { %s722_s16 = smov %s724_s20  ;;  %18 = sbr.rel (!%p16_p2) target bundleno = 6 (0x6), region = 77 }
 0x13d   :  { %297 = vsyncpa [#allocation3], 1 }
 0x13e   :  { %299 = vsyncpa [#allocation3 + $0x1], 1 }
 0x13f   :  { %300 = vsyncpa [#allocation4], 1 }
 0x140   :  { %302 = vsyncpa [#allocation4 + $0x1], 1 }

</bundles_post_ra>
